<compile_context>
chip_gen: v6e
topology: v6e:2x2x1
jax: 0.10.0
libtpu: 0.0.40
codegen_flags: <defaults>
</compile_context>

<pallas_src>
import jax
import jax.numpy as jnp
from jax.experimental import pallas as pl
from jax.experimental.pallas import tpu as pltpu


_LANE = 128                      # lane width
_MAX_TILE = 1024                 # cap per tile edge (multiple of 128, or full dim)
_TARGET_TILE_BYTES = 4 << 20     # ~4 MiB per input tile per grid step
_SMALL_FASTPATH_BYTES = 2 << 20  # whole-tensor single-block fast path threshold
_VMEM_LIMIT = 32 * 1024 * 1024   # explicit scoped VMEM (load-bearing on v5e)


def _transpose_kernel(x_ref, o_ref):
    # Block view: (TL, TD) -> (TD, TL)  (or (TB, TL, TD) -> (TB, TD, TL)).
    # Minor-dim swap lowers to the XLU transpose fast path.
    # TODO(synk): try pltpu.einshape for packed sub-32-bit tiles if XLU ever
    # becomes the binding slot on v7x; on v5e/v6e this kernel is HBM-bound.
    o_ref[...] = jnp.swapaxes(x_ref[...], -2, -1)


def _pick_edge_tile(dim):
    """Full dim if it fits the cap (always a legal block dim), else a lane
    multiple <= _MAX_TILE (evenly dividing if possible; masked edges if not)."""
    if dim <= _MAX_TILE:
        return dim
    best = 0
    t = _LANE
    while t <= _MAX_TILE:
        if dim % t == 0:
            best = t
        t += _LANE
    if best == 0:
        best = (_MAX_TILE // _LANE) * _LANE   # boundary blocks get masked stores
    return best


def _largest_divisor_leq(n, cap):
    cap = max(1, min(n, cap))
    for t in range(cap, 0, -1):
        if n % t == 0:
            return t
    return 1


def _transpose_last_two_3d(x):
    """(B, L, D) -> (B, D, L) via a tiled Pallas kernel (no pad/slice passes)."""
    B, L, D = x.shape
    itemsize = jnp.dtype(x.dtype).itemsize
    out_shape = jax.ShapeDtypeStruct((B, D, L), x.dtype)
    bytes_accessed = 2 * B * L * D * itemsize
    cost = pl.CostEstimate(flops=0, transcendentals=0,
                           bytes_accessed=bytes_accessed)

    # ---- Fast path: whole tensor in one block (tiny PatchTST activations).
    if B * L * D * itemsize <= _SMALL_FASTPATH_BYTES:
        return pl.pallas_call(
            _transpose_kernel,
            out_shape=out_shape,
            grid=(1,),
            in_specs=[pl.BlockSpec((B, L, D), lambda i: (0, 0, 0))],
            out_specs=pl.BlockSpec((B, D, L), lambda i: (0, 0, 0)),
            compiler_params=pltpu.CompilerParams(
                dimension_semantics=("arbitrary",),
                vmem_limit_bytes=_VMEM_LIMIT,
            ),
            cost_estimate=cost,
        )(x)

    # ---- Tiled path: lane-aligned (or full-dim) blocks, cdiv grid, no pad.
    TL = _pick_edge_tile(L)
    TD = _pick_edge_tile(D)
    nl = pl.cdiv(L, TL)
    nd = pl.cdiv(D, TD)

    # Fold batch rows so each grid step moves ~_TARGET_TILE_BYTES, but keep
    # enough grid steps so both TensorCores (v7x megacore) stay busy.
    tb_cap = max(1, _TARGET_TILE_BYTES // (TL * TD * itemsize))
    ld_steps = nl * nd
    if ld_steps < 4:
        min_batch_steps = min(B, max(2, 4 // ld_steps))
        tb_cap = max(1, min(tb_cap, B // min_batch_steps))
    TB = _largest_divisor_leq(B, tb_cap)

    # L-tile index innermost: successive output blocks are adjacent along the
    # output's lane (last) dim -> contiguous writeback with default buffering.
    grid = (B // TB, nd, nl)
    lead = pl.Squeezed() if TB == 1 else TB
    in_spec = pl.BlockSpec((lead, TL, TD), lambda b, d, l: (b, l, d))
    out_spec = pl.BlockSpec((lead, TD, TL), lambda b, d, l: (b, d, l))

    return pl.pallas_call(
        _transpose_kernel,
        out_shape=out_shape,
        grid=grid,
        in_specs=[in_spec],
        out_specs=out_spec,
        compiler_params=pltpu.CompilerParams(
            # No reduction axis: every output block is written exactly once,
            # so all grid axes can shard across TensorCores.
            dimension_semantics=("parallel", "parallel", "parallel"),
            vmem_limit_bytes=_VMEM_LIMIT,
        ),
        cost_estimate=cost,
    )(x)


def transpose_last_two(x):
    """Swap the last two axes of an N-D array (N >= 2) via the Pallas kernel."""
    if x.ndim == 2:
        return _transpose_last_two_3d(x[None])[0]
    if x.ndim == 3:
        return _transpose_last_two_3d(x)
    lead = x.shape[:-2]
    B = 1
    for s in lead:
        B *= s
    y = _transpose_last_two_3d(x.reshape(B, x.shape[-2], x.shape[-1]))
    return y.reshape(*lead, x.shape[-1], x.shape[-2])


class Transpose:
    """Mirror of the PyTorch module's interface (no parameters)."""

    def __init__(self, *dims, contiguous=False):
        assert len(dims) == 2, "Transpose expects exactly two dims."
        self.dims = dims
        # `contiguous` only affects materialization in torch; the Pallas kernel
        # always materializes a contiguous output.
        self.contiguous = contiguous

    def __call__(self, x):
        d0, d1 = (d % x.ndim for d in self.dims)
        if {d0, d1} == {x.ndim - 2, x.ndim - 1}:
            return transpose_last_two(x)
        # TODO(synk): non-minor-axis transposes (unused in PatchTST) fall back
        # to plain jnp.swapaxes rather than a dedicated Pallas kernel.
        return jnp.swapaxes(x, d0, d1)


if __name__ == "__main__":
    key = jax.random.PRNGKey(0)
    module = Transpose(1, 2, contiguous=True)

    # Small PatchTST-like activation: (batch*nvars, seq, d_model) -> fast path.
    B, L, D = 2, 8, 32
    x = jax.random.normal(key, (B, L, D), dtype=jnp.float32)
    y = jax.block_until_ready(module(x))
    assert y.shape == (B, D, L), y.shape
    assert y.dtype == x.dtype
    assert jnp.array_equal(y, jnp.swapaxes(x, 1, 2)), "f32 mismatch vs reference"

    # Realistic PatchTST shape (patch_num=42, d_model=128) in bf16 -> fast path.
    k1, k2, k3 = jax.random.split(key, 3)
    x2 = jax.random.normal(k2, (6, 42, 128), dtype=jnp.bfloat16)
    y2 = jax.block_until_ready(module(x2))
    assert y2.shape == (6, 128, 42), y2.shape
    assert jnp.array_equal(y2, jnp.swapaxes(x2, 1, 2)), "bf16 mismatch vs reference"

    # Tiled path: full-dim blocks, squeezed leading dim, grid over batch.
    x3 = jax.random.normal(k1, (4, 512, 384), dtype=jnp.float32)
    y3 = jax.block_until_ready(module(x3))
    assert y3.shape == (4, 384, 512), y3.shape
    assert jnp.array_equal(y3, jnp.swapaxes(x3, 1, 2)), "tiled mismatch vs reference"

    # Tiled path with masked edge blocks (L=1100 not a multiple of the tile).
    x4 = jax.random.normal(k3, (2, 1100, 256), dtype=jnp.float32)
    y4 = jax.block_until_ready(module(x4))
    assert y4.shape == (2, 256, 1100), y4.shape
    assert jnp.array_equal(y4, jnp.swapaxes(x4, 1, 2)), "edge-block mismatch vs reference"

    print("KERNEL_OK")
</pallas_src>

<mosaic_0001>
module attributes {stable_mosaic.version = 11 : i64} {
  func.func @_transpose_kernel(%arg0: i32, %arg1: memref<2x8x32xf32, #tpu.memory_space<vmem>>, %arg2: memref<2x32x8xf32, #tpu.memory_space<vmem>>) attributes {dimension_semantics = [#tpu.dimension_semantics<arbitrary>], iteration_bounds = array<i64: 1>, scalar_prefetch = 0 : i64, scratch_operands = 0 : i64, tpu.core_type = #tpu.core_type<tc>, window_params = [{pipeline_mode = #tpu.pipeline_mode<synchronous>, transform_indices = @transform_0, window_bounds = array<i64: 2, 8, 32>}, {pipeline_mode = #tpu.pipeline_mode<synchronous>, transform_indices = @transform_1, window_bounds = array<i64: 2, 32, 8>}]} {
    %c0 = arith.constant 0 : index
    %c0_0 = arith.constant 0 : index
    %c0_1 = arith.constant 0 : index
    %0 = vector.load %arg1[%c0, %c0_0, %c0_1] : memref<2x8x32xf32, #tpu.memory_space<vmem>>, vector<2x8x32xf32>
    %1 = tpu.transpose %0, [0, 2, 1] : vector<2x8x32xf32> -> vector<2x32x8xf32>
    %c0_2 = arith.constant 0 : index
    %c0_3 = arith.constant 0 : index
    %c0_4 = arith.constant 0 : index
    %2 = vector.load %arg2[%c0_2, %c0_3, %c0_4] : memref<2x32x8xf32, #tpu.memory_space<vmem>>, vector<2x32x8xf32>
    tpu.vector_store %arg2[%c0_2, %c0_3, %c0_4], %1 {strides = array<i32>} : memref<2x32x8xf32, #tpu.memory_space<vmem>>, vector<2x32x8xf32>,
    return
  }
  func.func @transform_0(%arg0: i32) -> (i32, i32, i32) {
    %c0_i32 = arith.constant 0 : i32
    %c0_i32_0 = arith.constant 0 : i32
    %c0_i32_1 = arith.constant 0 : i32
    %c0_i32_2 = arith.constant 0 : i32
    return %c0_i32, %c0_i32_0, %c0_i32_1 : i32, i32, i32
  }
  func.func @transform_1(%arg0: i32) -> (i32, i32, i32) {
    %c0_i32 = arith.constant 0 : i32
    %c0_i32_0 = arith.constant 0 : i32
    %c0_i32_1 = arith.constant 0 : i32
    %c0_i32_2 = arith.constant 0 : i32
    return %c0_i32, %c0_i32_0, %c0_i32_1 : i32, i32, i32
  }
}

</mosaic_0001>

<bundles_post_ra>
// kernel: tpu_custom_call.1
= control target key start
LH: loop header
LB: loop body
LE: loop exit
PB: predicated region body
PF: predicated region fallthrough
CT: control target
= control target key end

     0   :  { %6 = vsyncpa [#allocation3], 0  ;;  %s128_s6 = smov [#allocation2]   ;;  %s176_s0 = inlined_call_operand.hbm [shape: f32[2,8,32], index: 0, kind: input, shape index: {}]   ;;  %s177_s1 = inlined_call_operand.vmem [shape: f32[2,32,8], index: 1, kind: output, shape index: {}]  }
   0x1   :  { %s12_s7 = sshll.u32 %s128_s6, 4  ;;  %s13_s7 = int_to_ptr.vmem [resolvable:$true] %s12_s7 }
   0x2   :  { %s114_s8 = scalar_lea.vmem %s13_s7, 256  ;;  %p119_p1 = scmp.lt.s32.totalorder %s13_s7, %s13_s7 }
   0x3   :  { %p115_p0 = scmp.ne.s32.totalorder %s13_s7, %s114_s8  ;;  %p120_p2 = scmp.lt.s32.totalorder %s114_s8, %s114_s8 }
   0x5   :  { %p121_p3 = por %p120_p2, %p119_p1 }
   0x7   :  { %p122_p4 = pnand %p121_p3, %p115_p0 }
   0x9   :  { %125 = shalt.err (!%p122_p4)
}
   0xa   :  { %s129_s9 = smov 128   ;;  %s130_s10 = smov 8  }
   0xb   :  { %18 = dma.hbm_to_vmem [thread:$0]  %s176_s0, 256, %s13_s7, [#allocation3], %s129_s9, %s129_s9, %s130_s10  }
   0xc   :  { %126 = dma.done.wait [#allocation3], 256  }
   0xd   :  { %127 = vsyncadd [#allocation3], 4294967040  ;;  %v22_v0 = vld [vmem:[#allocation2] sm:$0xff]  ;;  %v23_v1 = vld [vmem:[#allocation2 + $0x8] sm:$0xff]  ;;  %vm88_vm0 = vcmask 64512  }
   0xe   :  { %24 = vxpose.xlu0.b32.start.end [1/1] (short) (narrow) %v22_v0, 32 }
  0x1b   :  { %56 = vxpose.xlu0.b32.start.end [1/1] (short) (narrow) %v23_v1, 32 }
  0x8a   :  { %v40_v2 = vpop.trf.xlu0 }
  0x8b   :  { %89 = vst.msk [vmem:[%s177_s1] sm:$0xff] %vm88_vm0, %v40_v2 }
  0x8e   :  { %v41_v3 = vpop.trf.xlu0 }
  0x8f   :  { %90 = vst.msk [vmem:[%s177_s1 + $0x8] sm:$0xff] %vm88_vm0, %v41_v3 }
  0x92   :  { %v42_v4 = vpop.trf.xlu0 }
  0x93   :  { %91 = vst.msk [vmem:[%s177_s1 + $0x10] sm:$0xff] %vm88_vm0, %v42_v4 }
  0x96   :  { %v43_v5 = vpop.trf.xlu0 }
  0x97   :  { %92 = vst.msk [vmem:[%s177_s1 + $0x18] sm:$0xff] %vm88_vm0, %v43_v5 }
  0x9a   :  { %v72_v6 = vpop.trf.xlu0 }
  0x9b   :  { %93 = vst.msk [vmem:[%s177_s1 + $0x20] sm:$0xff] %vm88_vm0, %v72_v6 }
  0x9e   :  { %v73_v7 = vpop.trf.xlu0 }
  0x9f   :  { %94 = vst.msk [vmem:[%s177_s1 + $0x28] sm:$0xff] %vm88_vm0, %v73_v7 }
  0xa2   :  { %v74_v8 = vpop.trf.xlu0 }
  0xa3   :  { %95 = vst.msk [vmem:[%s177_s1 + $0x30] sm:$0xff] %vm88_vm0, %v74_v8 }
  0xa6   :  { %v75_v9 = vpop.trf.xlu0 }
  0xa7   :  { %96 = vst.msk [vmem:[%s177_s1 + $0x38] sm:$0xff] %vm88_vm0, %v75_v9 }
  0xa8   :  { %101 = vsyncpa [#allocation3], 1 }

</bundles_post_ra>
